<compile_context>
chip_gen: v7x
topology: tpu7x:2x2x1
jax: 0.10.0
libtpu: 0.0.40
codegen_flags: <defaults>
</compile_context>

<pallas_src>
import jax
import jax.numpy as jnp
from jax import lax
from jax.experimental import pallas as pl
from jax.experimental.pallas import tpu as pltpu

EPS = 1e-6


def _norm2d_kernel(x_ref, w_ref, b_ref, o_ref):
    # x_ref/o_ref: (C, TILE_HW)  (batch dim squeezed by BlockSpec)
    # w_ref/b_ref: (C, 1) float32 (pre-cast in the wrapper)
    x = x_ref[...].astype(jnp.float32)                      # (C, T)
    c = x.shape[0]
    inv_c = 1.0 / c
    mean = jnp.sum(x, axis=0, keepdims=True) * inv_c        # (1, T) cross-sublane reduce
    xc = x - mean                                           # (C, T)
    var = jnp.sum(xc * xc, axis=0, keepdims=True) * inv_c   # (1, T) biased variance
    inv = lax.rsqrt(var + EPS)                              # (1, T) EUP
    y = xc * inv * w_ref[...] + b_ref[...]                  # (C, T)
    o_ref[...] = y.astype(o_ref.dtype)


def _round_up(x, m):
    return (x + m - 1) // m * m


def _choose_tile_hw(C, HW, max_block_f32_bytes):
    """Largest lane tile (multiple of 128) whose f32-equivalent block fits the budget.

    Budget is measured in f32 bytes (4 * C * tile_hw) because the kernel body
    materializes f32 temporaries regardless of the input dtype.
    """
    hw_pad = _round_up(HW, 128)
    max_lanes = (max_block_f32_bytes // (C * 4)) // 128 * 128
    max_lanes = max(128, max_lanes)   # lane tile can never be < 128 (layout constraint)
    return min(hw_pad, max_lanes)


def norm2d(x_nchw, weight, bias):
    """x_nchw: (B, C, H, W); weight, bias: (C,). Returns (B, C, H, W)."""
    B, C, H, W = x_nchw.shape
    HW = H * W
    itemsize = jnp.dtype(x_nchw.dtype).itemsize

    x3 = x_nchw.reshape(B, C, HW)                     # free reshape, no transpose
    # Pre-cast params to f32 once in the wrapper (avoids a per-grid-step cast).
    w2 = weight.astype(jnp.float32).reshape(C, 1)
    b2 = bias.astype(jnp.float32).reshape(C, 1)

    # --- Generation-aware VMEM budget -------------------------------------------------
    try:
        vmem_cap = int(pltpu.get_tpu_info().vmem_capacity_bytes)
    except Exception:
        vmem_cap = 64 * 1024 * 1024                   # conservative (v7x per-TC)
    if vmem_cap <= 64 * 1024 * 1024:
        max_block_f32_bytes = 2 * 1024 * 1024         # v7x: 64 MiB physical per TC
    else:
        max_block_f32_bytes = 4 * 1024 * 1024         # v5e/v6e: 128 MiB physical
    vmem_limit = min(int(0.65 * vmem_cap), 96 * 1024 * 1024)

    tile_hw = _choose_tile_hw(C, HW, max_block_f32_bytes)
    n_hw = pl.cdiv(HW, tile_hw)

    # --- Megacore utilization (v7x: 2 TCs) --------------------------------------------
    # Ensure at least 2 grid steps when the spatial axis is splittable, so both cores
    # get work even for B == 1.
    if B * n_hw < 2 and HW >= 2 * 128:
        tile_hw = _round_up(pl.cdiv(HW, 2), 128)
        n_hw = pl.cdiv(HW, tile_hw)

    # --- VMEM actually needed ----------------------------------------------------------
    # 2x double-buffered input + 2x double-buffered output blocks (native dtype) plus a
    # conservative ~3 block-sized f32 temporaries inside the body, plus ~1 MiB slack.
    block_native = C * tile_hw * itemsize
    block_f32 = C * tile_hw * 4
    vmem_need = 4 * block_native + 3 * block_f32 + (1 << 20)
    if vmem_need > vmem_limit:
        # Very large C: even a 128-lane block overshoots the target budget. Raise the
        # limit explicitly (capped at ~90% of physical) instead of silently spilling.
        vmem_limit = min(vmem_need, int(0.9 * vmem_cap))

    cost = pl.CostEstimate(
        flops=10 * B * C * HW,
        transcendentals=B * HW,
        bytes_accessed=2 * B * C * HW * itemsize + 2 * C * 4,
    )

    out = pl.pallas_call(
        _norm2d_kernel,
        out_shape=jax.ShapeDtypeStruct((B, C, HW), x_nchw.dtype),
        grid_spec=pltpu.PrefetchScalarGridSpec(
            num_scalar_prefetch=0,
            grid=(B, n_hw),
            in_specs=[
                # batch dim squeezed; lane-dense (C, tile_hw) block
                pl.BlockSpec((None, C, tile_hw), lambda b, j: (b, 0, j)),
                pl.BlockSpec((C, 1), lambda b, j: (0, 0)),
                pl.BlockSpec((C, 1), lambda b, j: (0, 0)),
            ],
            out_specs=pl.BlockSpec((None, C, tile_hw), lambda b, j: (b, 0, j)),
        ),
        compiler_params=pltpu.CompilerParams(
            dimension_semantics=("parallel", "parallel"),
            vmem_limit_bytes=vmem_limit,
        ),
        cost_estimate=cost,
    )(x3, w2, b2)

    return out.reshape(B, C, H, W)


def _reference(x_nchw, weight, bias):
    x = jnp.transpose(x_nchw, (0, 2, 3, 1)).astype(jnp.float32)
    mean = jnp.mean(x, axis=-1, keepdims=True)
    var = jnp.mean((x - mean) ** 2, axis=-1, keepdims=True)
    y = (x - mean) / jnp.sqrt(var + EPS) * weight + bias
    return jnp.transpose(y, (0, 3, 1, 2)).astype(x_nchw.dtype)


if __name__ == "__main__":
    key = jax.random.PRNGKey(0)
    kx, kw, kb = jax.random.split(key, 3)

    B, C, H, W = 2, 32, 16, 16  # embed_dim = C = 32
    x = jax.random.normal(kx, (B, C, H, W), dtype=jnp.float32)

    # Deterministic synthetic LayerNorm parameters (shapes per nn.LayerNorm(embed_dim)).
    weight = 1.0 + 0.05 * jax.random.normal(kw, (C,), dtype=jnp.float32)
    bias = 0.05 * jax.random.normal(kb, (C,), dtype=jnp.float32)

    out = norm2d(x, weight, bias)
    out = jax.block_until_ready(out)

    ref = _reference(x, weight, bias)
    assert out.shape == (B, C, H, W)
    assert jnp.max(jnp.abs(out - ref)) < 1e-4

    print("KERNEL_OK")
</pallas_src>

<mosaic_0001>
module attributes {stable_mosaic.version = 11 : i64} {
  func.func @_norm2d_kernel(%arg0: i32, %arg1: i32, %arg2: memref<1x32x256xf32, #tpu.memory_space<vmem>>, %arg3: memref<32x1xf32, #tpu.memory_space<vmem>>, %arg4: memref<32x1xf32, #tpu.memory_space<vmem>>, %arg5: memref<1x32x256xf32, #tpu.memory_space<vmem>>) attributes {dimension_semantics = [#tpu.dimension_semantics<parallel>, #tpu.dimension_semantics<parallel>], iteration_bounds = array<i64: 2, 1>, scalar_prefetch = 0 : i64, scratch_operands = 0 : i64, tpu.core_type = #tpu.core_type<tc>, window_params = [{transform_indices = @transform_0, window_bounds = array<i64: 1, 32, 256>}, {pipeline_mode = #tpu.pipeline_mode<synchronous>, transform_indices = @transform_1, window_bounds = array<i64: 32, 1>}, {pipeline_mode = #tpu.pipeline_mode<synchronous>, transform_indices = @transform_2, window_bounds = array<i64: 32, 1>}, {transform_indices = @transform_3, window_bounds = array<i64: 1, 32, 256>}]} {
    %c0 = arith.constant 0 : index
    %c0_0 = arith.constant 0 : index
    %c0_1 = arith.constant 0 : index
    %0 = vector.load %arg2[%c0, %c0_0, %c0_1] : memref<1x32x256xf32, #tpu.memory_space<vmem>>, vector<1x32x256xf32>
    %1 = vector.shape_cast %0 : vector<1x32x256xf32> to vector<32x256xf32>
    %cst = arith.constant dense<0.000000e+00> : vector<256xf32>
    %2 = vector.multi_reduction <add>, %1, %cst [0] : vector<32x256xf32> to vector<256xf32>
    %3 = vector.shape_cast %2 : vector<256xf32> to vector<1x256xf32>
    %cst_2 = arith.constant 3.125000e-02 : f32
    %4 = vector.broadcast %cst_2 : f32 to vector<1x256xf32>
    %5 = arith.mulf %3, %4 : vector<1x256xf32>
    %6 = vector.broadcast %5 : vector<1x256xf32> to vector<32x256xf32>
    %7 = arith.subf %1, %6 : vector<32x256xf32>
    %8 = arith.mulf %7, %7 : vector<32x256xf32>
    %cst_3 = arith.constant dense<0.000000e+00> : vector<256xf32>
    %9 = vector.multi_reduction <add>, %8, %cst_3 [0] : vector<32x256xf32> to vector<256xf32>
    %10 = vector.shape_cast %9 : vector<256xf32> to vector<1x256xf32>
    %cst_4 = arith.constant 3.125000e-02 : f32
    %11 = vector.broadcast %cst_4 : f32 to vector<1x256xf32>
    %12 = arith.mulf %10, %11 : vector<1x256xf32>
    %cst_5 = arith.constant 9.99999997E-7 : f32
    %13 = vector.broadcast %cst_5 : f32 to vector<1x256xf32>
    %14 = arith.addf %12, %13 : vector<1x256xf32>
    %15 = math.rsqrt %14 : vector<1x256xf32>
    %16 = vector.broadcast %15 : vector<1x256xf32> to vector<32x256xf32>
    %17 = arith.mulf %7, %16 : vector<32x256xf32>
    %c0_6 = arith.constant 0 : index
    %c0_7 = arith.constant 0 : index
    %18 = vector.load %arg3[%c0_6, %c0_7] : memref<32x1xf32, #tpu.memory_space<vmem>>, vector<32x1xf32>
    %19 = vector.broadcast %18 : vector<32x1xf32> to vector<32x256xf32>
    %20 = arith.mulf %17, %19 : vector<32x256xf32>
    %c0_8 = arith.constant 0 : index
    %c0_9 = arith.constant 0 : index
    %21 = vector.load %arg4[%c0_8, %c0_9] : memref<32x1xf32, #tpu.memory_space<vmem>>, vector<32x1xf32>
    %22 = vector.broadcast %21 : vector<32x1xf32> to vector<32x256xf32>
    %23 = arith.addf %20, %22 : vector<32x256xf32>
    %c0_10 = arith.constant 0 : index
    %c0_11 = arith.constant 0 : index
    %c0_12 = arith.constant 0 : index
    %24 = vector.load %arg5[%c0_10, %c0_11, %c0_12] : memref<1x32x256xf32, #tpu.memory_space<vmem>>, vector<1x32x256xf32>
    %25 = vector.shape_cast %24 : vector<1x32x256xf32> to vector<32x256xf32>
    %26 = vector.shape_cast %23 : vector<32x256xf32> to vector<1x32x256xf32>
    tpu.vector_store %arg5[%c0_10, %c0_11, %c0_12], %26 {strides = array<i32>} : memref<1x32x256xf32, #tpu.memory_space<vmem>>, vector<1x32x256xf32>,
    return
  }
  func.func @transform_0(%arg0: i32, %arg1: i32) -> (i32, i32, i32) {
    %c0_i32 = arith.constant 0 : i32
    %c0_i32_0 = arith.constant 0 : i32
    return %arg0, %c0_i32, %arg1 : i32, i32, i32
  }
  func.func @transform_1(%arg0: i32, %arg1: i32) -> (i32, i32) {
    %c0_i32 = arith.constant 0 : i32
    %c0_i32_0 = arith.constant 0 : i32
    %c0_i32_1 = arith.constant 0 : i32
    return %c0_i32, %c0_i32_0 : i32, i32
  }
  func.func @transform_2(%arg0: i32, %arg1: i32) -> (i32, i32) {
    %c0_i32 = arith.constant 0 : i32
    %c0_i32_0 = arith.constant 0 : i32
    %c0_i32_1 = arith.constant 0 : i32
    return %c0_i32, %c0_i32_0 : i32, i32
  }
  func.func @transform_3(%arg0: i32, %arg1: i32) -> (i32, i32, i32) {
    %c0_i32 = arith.constant 0 : i32
    %c0_i32_0 = arith.constant 0 : i32
    return %arg0, %c0_i32, %arg1 : i32, i32, i32
  }
}

</mosaic_0001>

<bundles_post_ra>
// kernel: tpu_custom_call.1
= control target key start
LH: loop header
LB: loop body
LE: loop exit
PB: predicated region body
PF: predicated region fallthrough
CT: control target
= control target key end

     0   :  { %8 = vsyncpa [#allocation3], 0  ;;  %s904_s0 = inlined_call_operand.hbm [shape: f32[2,32,256], index: 0, kind: input, shape index: {}]   ;;  %s905_s1 = inlined_call_operand.vmem [shape: f32[32,1], index: 1, kind: input, shape index: {}]   ;;  %s906_s2 = inlined_call_operand.vmem [shape: f32[32,1], index: 2, kind: input, shape index: {}]   ;;  %s907_s3 = inlined_call_operand.hbm [shape: f32[2,32,256], index: 3, kind: output, shape index: {}]  }
   0x1   :  { %10 = vsyncpa [#allocation3 + $0x1], 0 }
   0x2   :  { %11 = vsyncpa [#allocation4], 0 }
   0x3   :  { %13 = vsyncpa [#allocation4 + $0x1], 0  ;;  %s691_s12 = smov 0   ;;  %s693_s13 = smov 0  }
   0x4   :  { %s695_s14 = smov 0   ;;  %s697_s15 = smov 0  }
   0x5   :  { %s699_s16 = smov 0   ;;  %s701_s17 = smov 0  }
   0x6 LB: > { %s460_s18 = sadd.s32 4294967295, %s662_s17   ;;  %s461_s19 = sadd.s32 4294967294, %s662_s17   ;;  %s662_s17 = sphi %s701_s17, %s19_s17   ;;  %s658_s16 = sphi %s699_s16, %s922_s16   ;;  %s654_s15 = sphi %s697_s15, %s921_s15   ;;  %s650_s14 = sphi %s695_s14, %s920_s14   ;;  %s646_s13 = sphi %s693_s13, %s919_s13   ;;  %s642_s12 = sphi %s691_s12, %s918_s12  }
   0x7   : > { %s31_s20 = sadd.s32 1, %s658_s16  ;;  %s40_s21 = sadd.s32 1, %s650_s14 }
   0x8   : > { %p33_p0 = scmp.ge.s32.totalorder %s31_s20, 2  ;;  %p47_p1 = scmp.ne.s32.totalorder %s650_s14, %s646_s13 }
   0x9   : > { %p48_p2 = scmp.eq.s32.totalorder %s662_s17, 0  ;;  %p53_p3 = scmp.ne.s32.totalorder %s646_s13, %s642_s12 }
   0xa   : > { %s924_s20 = smov (%p33_p0, %s31_s20), 0  ;;  %p54_p5 = scmp.eq.s32.totalorder %s460_s18, 0 }
   0xb   : > { %p732_p4 = por %p48_p2, %p47_p1  ;;  %s35_s23 = ssub.s32 %s658_s16, %s924_s20 }
   0xc   : > { %p121_p6 = scmp.eq.s32.totalorder %s460_s18, 1  ;;  %p38_p7 = scmp.eq.s32.totalorder %s35_s23, 0 }
   0xd   : > { %p738_p8 = por %p54_p5, %p53_p3  ;;  %p127_p10 = scmp.eq.s32.totalorder %s461_s19, 1 }
   0xe   : > { %p742_p9 = por %p121_p6, %p47_p1  ;;  %p489_p13 = scmp.lt.s32.totalorder %s662_s17, 2 }
   0xf   : > { %s747_s26 = scalar_select %p38_p7, %s650_s14, %s40_s21  }
  0x10   : > { %s911_s25 = scalar_select %p742_p9, 1, 0 }
  0x11   : > { %p749_p11 = por %p127_p10, %p53_p3  ;;  %s153_s28 = sand.u32 1, %s650_s14  }
  0x12   : > { %s464_s29 = sshll.u32 %s153_s28, 6  ;;  %s475_s30 = sshll.u32 %s658_s16, 10 }
  0x13   : > { %s912_s27 = scalar_select %p749_p11, 1, 0 }
  0x14   : > { %s760_s6 = scalar_lea.hbm %s904_s0, %s475_s30  ;;  %s157_s7 = scalar_lea.vmem [#allocation2], %s464_s29 }
  0x15   : > { %s166_s8 = sshll.u32 %s157_s7, 4  ;;  %p766_p0 = pnand %p489_p13, %p732_p4  ;;  %s762_s8 = int_to_ptr.vmem [resolvable:$true] %s166_s8 }
  0x16   : > { %s771_s10 = scalar_lea.sflag [#allocation3], %s153_s28  ;;  %s550_s11 = scalar_lea.hbm %s760_s6, 1024 }
  0x17   : > { %p551_p2 = scmp.ne.s32.totalorder %s760_s6, %s550_s11  ;;  %p552_p3 = pneg %p766_p0 }
  0x18   : > { %s555_s21 = scalar_lea.hbm %s904_s0, 2048  ;;  %p556_p4 = scmp.lt.u32.totalorder %s760_s6, %s904_s0 }
  0x19   : > { %p553_p5 = pnand %p552_p3, %p551_p2  ;;  %p557_p7 = scmp.lt.u32.totalorder %s555_s21, %s550_s11 }
  0x1a   : > { %p559_p13 = scmp.lt.u32.totalorder %s550_s11, %s760_s6 }
  0x1b   : > { %p554_p6 = pneg %p553_p5  ;;  %p558_p10 = por %p557_p7, %p556_p4 }
  0x1d   : > { %p560_p12 = por %p559_p13, %p558_p10 }
  0x1f   : > { %p561_p1 = pnand %p560_p12, %p554_p6 }
  0x21   : > { %564 = shalt.err (!%p561_p1)
}
  0x22   : > { %s565_s28 = scalar_lea.vmem %s762_s8, 1024  ;;  %s664_s29 = smov [#allocation2]  }
  0x23   : > { %p566_p2 = scmp.ne.s32.totalorder %s762_s8, %s565_s28  ;;  %s570_s30 = sshll.u32 %s664_s29, 4  ;;  %s571_s30 = int_to_ptr.vmem [resolvable:$false] %s570_s30 }
  0x24   : > { %s572_s4 = scalar_lea.vmem %s571_s30, 2048  ;;  %p573_p9 = scmp.lt.s32.totalorder %s762_s8, %s571_s30 }
  0x25   : > { %p568_p5 = pnand %p566_p2, %p552_p3  ;;  %p574_p4 = scmp.lt.s32.totalorder %s572_s4, %s565_s28 }
  0x27   : > { %p569_p11 = pneg %p568_p5  ;;  %p575_p7 = por %p574_p4, %p573_p9 }
  0x29   : > { %p576_p10 = pnand %p575_p7, %p569_p11 }
  0x2b   : > { %579 = shalt.err (!%p576_p10)
}
  0x2c   : > { %s665_s5 = smov 256   ;;  %s666_s7 = smov 16  }
  0x2d   : > { %484 = dma.hbm_to_vmem [thread:$0]  (!%p766_p0), %s760_s6, 1024, %s762_s8, %s771_s10, %s665_s5, %s665_s5, %s666_s7  }
  0x2e   : > { %p174_p12 = scmp.lt.s32.totalorder %s662_s17, 3  ;;  %p914_p1 = scmp.ge.s32.totalorder %s662_s17, 1 }
  0x30   : > { %p175_p3 = pnand %p914_p1, %p174_p12 }
  0x31   : > { %s803_s11 = sand.u32 (!%p175_p3), 1, %s646_s13  }
  0x32   : > { %178 = sbr.rel (%p175_p3) target bundleno = 218 (0xda), region = 32  ;;  %s468_s18 = sshll.u32 (!%p175_p3), %s803_s11, 6 }
  0x33   : > { %s181_s19 = scalar_lea.sflag (!%p175_p3), [#allocation3], %s803_s11  ;;  %s809_s21 = scalar_lea.vmem (!%p175_p3), [#allocation2], %s468_s18 }
  0x39   : > { %633 = dma.done.wait (%p738_p8), %s181_s19, 1024  }
  0x3a   : > { %635 = vsyncadd (%p738_p8), %s181_s19, 4294966272  ;;  %v667_v0 = vmov 0   ;;  %v287_v1 = vld [vmem:[%s905_s1 + $0x10] sm:$0xff]  ;;  %v285_v2 = vld [vmem:[%s905_s1] sm:$0xff]  ;;  %s476_s10 = sshll.u32 %s654_s15, 10  ;;  %s358_s23 = scalar_lea.sflag [#allocation4], %s803_s11 }
  0x3b   : > { %545 = vset.pattern.permute.xlu1 %v667_v0  ;;  %544 = vset.pattern.permute.xlu0 %v667_v0  ;;  %v288_v3 = vld [vmem:[%s905_s1 + $0x18] sm:$0xff]  ;;  %v286_v4 = vld [vmem:[%s905_s1 + $0x8] sm:$0xff]  ;;  %v317_v6 = vld [vmem:[%s906_s2] sm:$0xff]  ;;  %s855_s15 = scalar_lea.hbm %s907_s3, %s476_s10  ;;  %p915_p9 = scmp.ne.s32.totalorder %s911_s25, 0 }
  0x3c   : > { %301 = vperm.xlu1 %545, %v287_v1   ;;  %291 = vperm.xlu0 %544, %v285_v2   ;;  %v318_v5 = vld [vmem:[%s906_s2 + $0x8] sm:$0xff]  ;;  %v320_v7 = vld [vmem:[%s906_s2 + $0x18] sm:$0xff]  ;;  %v319_v8 = vld [vmem:[%s906_s2 + $0x10] sm:$0xff]  ;;  %s668_s28 = smov [#allocation5]  }
  0x3d   : > { %v209_v9 = vld [vmem:[%s809_s21] sm:$0xff]  ;;  %v211_v10 = vld [vmem:[%s809_s21 + $0x10] sm:$0xff]  ;;  %v210_v11 = vld [vmem:[%s809_s21 + $0x8] sm:$0xff]  ;;  %s584_s29 = sshll.u32 %s668_s28, 4  ;;  %s585_s29 = int_to_ptr.vmem [resolvable:$false] %s584_s29 }
  0x3e   : > { %v212_v12 = vld [vmem:[%s809_s21 + $0x18] sm:$0xff]  ;;  %v217_v13 = vadd.f32 %v211_v10, %v209_v9  ;;  %v213_v14 = vld [vmem:[%s809_s21 + $0x20] sm:$0xff]  ;;  %v214_v16 = vld [vmem:[%s809_s21 + $0x28] sm:$0xff]  ;;  %s586_s30 = scalar_lea.vmem %s585_s29, 2048 }
  0x3f   : > { %v226_v15 = vadd.f32 %v212_v12, %v210_v11  ;;  %v215_v18 = vld [vmem:[%s809_s21 + $0x30] sm:$0xff]  ;;  %v216_v20 = vld [vmem:[%s809_s21 + $0x38] sm:$0xff]  ;;  %s206_s21 = scalar_lea.vmem [#allocation5], %s468_s18 }
  0x40   : > { %306 = vperm.xlu1 %545, %v288_v3   ;;  %296 = vperm.xlu0 %544, %v286_v4   ;;  %v218_v17 = vadd.f32 %v217_v13, %v213_v14  ;;  %s373_s9 = sshll.u32 %s206_s21, 4  ;;  %s850_s9 = int_to_ptr.vmem [resolvable:$true] %s373_s9 }
  0x41   : > { %v227_v19 = vadd.f32 %v226_v15, %v214_v16  ;;  %s580_s24 = scalar_lea.vmem %s850_s9, 1024  ;;  %p587_p6 = scmp.lt.s32.totalorder %s850_s9, %s585_s29 }
  0x42   : > { %v219_v21 = vadd.f32 %v218_v17, %v215_v18  ;;  %p581_p8 = scmp.ne.s32.totalorder %s850_s9, %s580_s24  ;;  %p588_p13 = scmp.lt.s32.totalorder %s586_s30, %s580_s24 }
  0x43   : > { %v228_v22 = vadd.f32 %v227_v19, %v216_v20 }
  0x44   : > { %328 = vperm.xlu1 %545, %v318_v5   ;;  %323 = vperm.xlu0 %544, %v317_v6   ;;  %v220_v23 = vrot.slane %v219_v21, 4  ;;  %p582_p11 = pnand %p581_p8, %p915_p9  ;;  %p589_p2 = por %p588_p13, %p587_p6 }
  0x45   : > { %v229_v24 = vrot.slane %v228_v22, 4 }
  0x46   : > { %v221_v25 = vadd.f32 %v220_v23, %v219_v21  ;;  %p583_p0 = pneg %p582_p11 }
  0x47   : > { %v230_v26 = vadd.f32 %v229_v24, %v228_v22 }
  0x48   : > { %338 = vperm.xlu1 %545, %v320_v7   ;;  %333 = vperm.xlu0 %544, %v319_v8   ;;  %v222_v27 = vrot.slane %v221_v25, 2  ;;  %p590_p5 = pnand %p589_p2, %p583_p0 }
  0x49   : > { %v231_v28 = vrot.slane %v230_v26, 2 }
  0x4a   : > { %v223_v29 = vadd.f32 %v222_v27, %v221_v25 }
  0x4b   : > { %v232_v30 = vadd.f32 %v231_v28, %v230_v26 }
  0x4c   : > { %v224_v31 = vrot.slane %v223_v29, 1 }
  0x4d   : > { %v233_v32 = vrot.slane %v232_v30, 1 }
  0x4e   : > { %v225_v33 = vadd.f32 %v224_v31, %v223_v29 }
  0x4f   : > { %v234_v34 = vadd.f32 %v233_v32, %v232_v30 }
  0x50   : > { %v235_v35 = vmul.f32 0.03125, %v225_v33 }
  0x51   : > { %v236_v36 = vmul.f32 0.03125, %v234_v34 }
  0x52   : > { %v237_v37 = vsub.f32 %v209_v9, %v235_v35  ;;  %v239_v38 = vsub.f32 %v211_v10, %v235_v35  ;;  %v241_v41 = vsub.f32 %v213_v14, %v235_v35  ;;  %v243_v47 = vsub.f32 %v215_v18, %v235_v35 }
  0x53   : > { %v238_v39 = vsub.f32 %v210_v11, %v236_v36  ;;  %v240_v40 = vsub.f32 %v212_v12, %v236_v36  ;;  %v242_v44 = vsub.f32 %v214_v16, %v236_v36  ;;  %v244_v50 = vsub.f32 %v216_v20, %v236_v36 }
  0x54   : > { %v245_v42 = vmul.f32 %v237_v37, %v237_v37  ;;  %v247_v43 = vmul.f32 %v239_v38, %v239_v38  ;;  %v249_v48 = vmul.f32 %v241_v41, %v241_v41  ;;  %v251_v53 = vmul.f32 %v243_v47, %v243_v47 }
  0x55   : > { %v246_v45 = vmul.f32 %v238_v39, %v238_v39  ;;  %v248_v46 = vmul.f32 %v240_v40, %v240_v40  ;;  %v250_v51 = vmul.f32 %v242_v44, %v242_v44  ;;  %v252_v55 = vmul.f32 %v244_v50, %v244_v50 }
  0x56   : > { %v253_v49 = vadd.f32 %v247_v43, %v245_v42 }
  0x57   : > { %v262_v52 = vadd.f32 %v248_v46, %v246_v45 }
  0x58   : > { %v254_v54 = vadd.f32 %v253_v49, %v249_v48 }
  0x59   : > { %v263_v56 = vadd.f32 %v262_v52, %v250_v51 }
  0x5a   : > { %v255_v57 = vadd.f32 %v254_v54, %v251_v53 }
  0x5b   : > { %v264_v58 = vadd.f32 %v263_v56, %v252_v55 }
  0x5c   : > { %v256_v59 = vrot.slane %v255_v57, 4 }
  0x5d   : > { %v265_v60 = vrot.slane %v264_v58, 4 }
  0x5e   : > { %v257_v61 = vadd.f32 %v256_v59, %v255_v57 }
  0x5f   : > { %v266_v62 = vadd.f32 %v265_v60, %v264_v58 }
  0x60   : > { %v258_v63 = vrot.slane %v257_v61, 2 }
  0x61   : > { %v267_v0 = vrot.slane %v266_v62, 2 }
  0x62   : > { %v259_v1 = vadd.f32 %v258_v63, %v257_v61 }
  0x63   : > { %v268_v2 = vadd.f32 %v267_v0, %v266_v62 }
  0x64   : > { %v260_v3 = vrot.slane %v259_v1, 1 }
  0x65   : > { %v269_v4 = vrot.slane %v268_v2, 1 }
  0x66   : > { %v261_v5 = vadd.f32 %v260_v3, %v259_v1 }
  0x67   : > { %v270_v6 = vadd.f32 %v269_v4, %v268_v2 }
  0x68   : > { %v271_v7 = vmul.f32 0.03125, %v261_v5 }
  0x69   : > { %v272_v8 = vmul.f32 0.03125, %v270_v6 }
  0x6a   : > { %v273_v9 = vadd.f32 1e-06, %v271_v7 }
  0x6b   : > { %v274_v10 = vadd.f32 1e-06, %v272_v8 }
  0x6c   : > { %546 = vrsqrt.f32 %v273_v9 }
  0x6d   : > { %548 = vrsqrt.f32 %v274_v10 }
  0x76   : > { %v547_v11 = vpop.eup %546 }
  0x77   : > { %v549_v12 = vpop.eup %548  ;;  %v277_v15 = vmul.f32 %v547_v11, %v237_v37  ;;  %v279_v17 = vmul.f32 %v547_v11, %v239_v38  ;;  %v281_v21 = vmul.f32 %v547_v11, %v241_v41  ;;  %v283_v23 = vmul.f32 %v547_v11, %v243_v47 }
  0x78   : > { %v278_v16 = vmul.f32 %v549_v12, %v238_v39  ;;  %v280_v18 = vmul.f32 %v549_v12, %v240_v40  ;;  %v282_v22 = vmul.f32 %v549_v12, %v242_v44  ;;  %v284_v24 = vmul.f32 %v549_v12, %v244_v50 }
  0xbb   : > { %v302_v13 = vpop.permute.xlu1 %301  ;;  %v292_v14 = vpop.permute.xlu0 %291 }
  0xbc   : > { %v309_v25 = vmul.f32 %v292_v14, %v277_v15  ;;  %v310_v26 = vmul.f32 %v292_v14, %v278_v16  ;;  %v313_v35 = vmul.f32 %v302_v13, %v281_v21  ;;  %v314_v36 = vmul.f32 %v302_v13, %v282_v22 }
  0xbf   : > { %v307_v19 = vpop.permute.xlu1 %306  ;;  %v297_v20 = vpop.permute.xlu0 %296 }
  0xc0   : > { %v311_v27 = vmul.f32 %v297_v20, %v279_v17  ;;  %v312_v28 = vmul.f32 %v297_v20, %v280_v18  ;;  %v315_v37 = vmul.f32 %v307_v19, %v283_v23  ;;  %v316_v38 = vmul.f32 %v307_v19, %v284_v24 }
  0xc3   : > { %v329_v29 = vpop.permute.xlu1 %328  ;;  %v324_v30 = vpop.permute.xlu0 %323 }
  0xc4   : > { %v343_v31 = vadd.f32 %v329_v29, %v311_v27  ;;  %v344_v32 = vadd.f32 %v329_v29, %v312_v28  ;;  %v341_v33 = vadd.f32 %v324_v30, %v309_v25  ;;  %v342_v34 = vadd.f32 %v324_v30, %v310_v26 }
  0xc6   : > { %351 = vst [vmem:[%s206_s21 + $0x10] sm:$0xff] %v343_v31  ;;  %352 = vst [vmem:[%s206_s21 + $0x18] sm:$0xff] %v344_v32 }
  0xc7   : > { %349 = vst [vmem:[%s206_s21] sm:$0xff] %v341_v33  ;;  %350 = vst [vmem:[%s206_s21 + $0x8] sm:$0xff] %v342_v34  ;;  %v339_v39 = vpop.permute.xlu1 %338  ;;  %v334_v40 = vpop.permute.xlu0 %333 }
  0xc8   : > { %v347_v41 = vadd.f32 %v339_v39, %v315_v37  ;;  %v348_v42 = vadd.f32 %v339_v39, %v316_v38  ;;  %v345_v43 = vadd.f32 %v334_v40, %v313_v35  ;;  %v346_v44 = vadd.f32 %v334_v40, %v314_v36 }
  0xca   : > { %355 = vst [vmem:[%s206_s21 + $0x30] sm:$0xff] %v347_v41  ;;  %356 = vst [vmem:[%s206_s21 + $0x38] sm:$0xff] %v348_v42 }
  0xcb   : > { %353 = vst [vmem:[%s206_s21 + $0x20] sm:$0xff] %v345_v43  ;;  %354 = vst [vmem:[%s206_s21 + $0x28] sm:$0xff] %v346_v44 }
  0xcc   : > { %593 = shalt.err (!%p590_p5)
}
  0xcd   : > { %s594_s4 = scalar_lea.hbm %s855_s15, 1024  ;;  %s598_s19 = scalar_lea.hbm %s907_s3, 2048 }
  0xce   : > { %p595_p4 = scmp.ne.s32.totalorder %s855_s15, %s594_s4  ;;  %p599_p12 = scmp.lt.u32.totalorder %s855_s15, %s907_s3 }
  0xcf   : > { %p600_p1 = scmp.lt.u32.totalorder %s598_s19, %s594_s4  ;;  %p602_p8 = scmp.lt.u32.totalorder %s594_s4, %s855_s15 }
  0xd0   : > { %p596_p7 = pnand %p595_p4, %p915_p9 }
  0xd1   : > { %p601_p3 = por %p600_p1, %p599_p12 }
  0xd2   : > { %p597_p10 = pneg %p596_p7 }
  0xd3   : > { %p603_p11 = por %p602_p8, %p601_p3 }
  0xd5   : > { %p604_p0 = pnand %p603_p11, %p597_p10 }
  0xd7   : > { %607 = shalt.err (!%p604_p0)
}
  0xd8   : > { %s669_s21 = smov 256   ;;  %s670_s10 = smov 16  }
  0xd9   : > { %479 = dma.vmem_to_hbm [thread:$0]  (%p915_p9), %s850_s9, 1024, %s855_s15, %s358_s23, %s669_s21, %s669_s21, %s670_s10  }
  0xda PF: > { %s388_s18 = sand.u32 1, %s642_s12   ;;  %p916_p6 = scmp.ne.s32.totalorder %s912_s27, 0 }
  0xdb   : > { %p917_p13 = scmp.ge.s32.totalorder %s662_s17, 2  ;;  %s389_s22 = scalar_lea.sflag [#allocation4], %s388_s18 }
  0xdd   : > { %p486_p2 = pnand %p917_p13, %p916_p6 }
  0xdf   : > { %637 = dma.done.wait (!%p486_p2), %s389_s22, 1024  }
  0xe0   : > { %639 = vsyncadd (!%p486_p2), %s389_s22, 4294966272  ;;  %s19_s17 = sadd.s32 1, %s662_s17   ;;  %s918_s12 = smov %s646_s13 }
  0xe1   : > { %p16_p5 = scmp.ge.s32.totalorder %s19_s17, 4   ;;  %s919_s13 = smov %s650_s14 }
  0xe2   : > { %s920_s14 = smov %s747_s26  ;;  %s921_s15 = smov %s658_s16 }
  0xe3   : > { %s922_s16 = smov %s924_s20  ;;  %18 = sbr.rel (!%p16_p5) target bundleno = 6 (0x6), region = 77 }
  0xea   :  { %394 = vsyncpa [#allocation3], 1 }
  0xeb   :  { %396 = vsyncpa [#allocation3 + $0x1], 1 }
  0xec   :  { %397 = vsyncpa [#allocation4], 1 }
  0xed   :  { %399 = vsyncpa [#allocation4 + $0x1], 1 }

</bundles_post_ra>
